<compile_context>
chip_gen: v6e
topology: v6e:2x2x1
jax: 0.10.0
libtpu: 0.0.40
codegen_flags: <defaults>
</compile_context>

<pallas_src>
import jax
import jax.numpy as jnp
from jax import lax
from jax.experimental import pallas as pl
from jax.experimental.pallas import tpu as pltpu


# ----------------------------------------------------------------------------
# fused Pallas kernel (one batch element per grid step)
# ----------------------------------------------------------------------------
def _make_resblock_kernel(H, W, slope):
    N = H * W

    def kernel(x_ref, m_ref, w1_ref, w2_ref,
               s1_ref, t1_ref, s2_ref, t2_ref, b2_ref, o_ref):
        # x_ref : (1, C,  N) f32   input (this batch element), N = H*W
        # m_ref : (9, C,  N) f32   0/1 zero-padding masks, one per 3x3 tap
        # w1_ref: (9, C,  C) bf16  conv_1 weight, tap-major: w1[k] = W[:, :, kh, kw]
        # w2_ref: (9, Co, C) bf16  conv_2 weight, tap-major
        # s?,t? : (C, 1)     f32   folded BatchNorm scale / shift
        # b2_ref: (Co, 1)    f32   conv_2 bias
        # o_ref : (1, Co, N) f32   output
        x = x_ref[0]                                            # (C, N) f32

        def act(z):  # ReLU (slope=0.0) or LeakyReLU (slope=0.01), f32 VPU math
            return jnp.where(z > 0, z, slope * z)

        def conv3x3(h, w_ref):
            # 3x3, stride 1, pad 1 conv as 9 accumulated shifted MXU matmuls.
            acc = None
            for kh in range(3):
                for kw in range(3):
                    k = kh * 3 + kw
                    off = (kh - 1) * W + (kw - 1)        # flat neighbour offset
                    shift = (-off) % N                   # tap[n] = h[n + off]
                    shifted = h if shift == 0 else pltpu.roll(h, shift, axis=1)
                    # mask multiply = zero padding at the image border
                    tap = (shifted * m_ref[k]).astype(jnp.bfloat16)
                    part = jnp.dot(w_ref[k], tap,
                                   preferred_element_type=jnp.float32)
                    acc = part if acc is None else acc + part
            return acc                                          # (Cout, N) f32

        h1 = act(s1_ref[...] * x + t1_ref[...])   # BN1 + activation (f32)
        y1 = conv3x3(h1, w1_ref)                  # conv_1 (bias folded into t2)
        h2 = act(s2_ref[...] * y1 + t2_ref[...])  # BN2 + activation (f32)
        y2 = conv3x3(h2, w2_ref)                  # conv_2
        o_ref[0] = x + y2 + b2_ref[...]           # residual + conv_2 bias

    return kernel


# ----------------------------------------------------------------------------
# wrapper
# ----------------------------------------------------------------------------
def residual_block_forward(x, params, activate="relu", eps=1e-5):
    """ResidualBlock.forward: x + conv_2(act(BN2(conv_1(act(BN1(x))))))."""
    B, C, H, W = x.shape
    Co = params["w2"].shape[0]
    N = H * W
    slope = 0.0 if activate == "relu" else 0.01     # nn.LeakyReLU default slope
    assert Co == C, "residual add requires input_dim == output_dim"

    # fold BatchNorm (inference mode) into per-channel scale / shift (f32)
    s1 = params["g1"] / jnp.sqrt(params["v1"] + eps)
    t1 = params["be1"] - params["m1"] * s1
    s2 = params["g2"] / jnp.sqrt(params["v2"] + eps)
    t2 = params["be2"] - params["m2"] * s2 + s2 * params["b1"]  # conv_1 bias folded

    # channel-major flattened activation; tap-major bf16 weights for the MXU
    xf = x.reshape(B, C, N).astype(jnp.float32)
    w1 = jnp.transpose(params["w1"], (2, 3, 0, 1)).reshape(9, C, C).astype(jnp.bfloat16)
    w2 = jnp.transpose(params["w2"], (2, 3, 0, 1)).reshape(9, Co, C).astype(jnp.bfloat16)

    # 0/1 zero-padding masks per tap (tiny constant data, NOT activation im2col)
    n_idx = jnp.arange(N, dtype=jnp.int32)
    row, col = n_idx // W, n_idx % W
    mask_rows = []
    for kh in range(3):
        for kw in range(3):
            dh, dw = kh - 1, kw - 1
            mask_rows.append((row + dh >= 0) & (row + dh < H) &
                             (col + dw >= 0) & (col + dw < W))
    masks = jnp.broadcast_to(
        jnp.stack(mask_rows)[:, None, :].astype(jnp.float32), (9, C, N))

    kernel = _make_resblock_kernel(H, W, slope)
    out = pl.pallas_call(
        kernel,
        out_shape=jax.ShapeDtypeStruct((B, Co, N), jnp.float32),
        grid=(B,),
        in_specs=[
            pl.BlockSpec((1, C, N), lambda b: (b, 0, 0)),     # x (per batch)
            pl.BlockSpec((9, C, N), lambda b: (0, 0, 0)),     # border masks
            pl.BlockSpec((9, C, C), lambda b: (0, 0, 0)),     # conv_1 weight (bf16)
            pl.BlockSpec((9, Co, C), lambda b: (0, 0, 0)),    # conv_2 weight (bf16)
            pl.BlockSpec((C, 1), lambda b: (0, 0)),           # BN1 scale
            pl.BlockSpec((C, 1), lambda b: (0, 0)),           # BN1 shift
            pl.BlockSpec((C, 1), lambda b: (0, 0)),           # BN2 scale
            pl.BlockSpec((C, 1), lambda b: (0, 0)),           # BN2 shift (+conv_1 bias)
            pl.BlockSpec((Co, 1), lambda b: (0, 0)),          # conv_2 bias
        ],
        out_specs=pl.BlockSpec((1, Co, N), lambda b: (b, 0, 0)),
        compiler_params=pltpu.CompilerParams(
            dimension_semantics=("parallel",),
            vmem_limit_bytes=32 * 1024 * 1024,  # tiny usage; valid on v5e/v6e/v7x
        ),
    )(xf, masks, w1, w2,
      s1.reshape(C, 1), t1.reshape(C, 1), s2.reshape(C, 1), t2.reshape(C, 1),
      params["b2"].reshape(Co, 1))
    return out.reshape(B, Co, H, W)


# ----------------------------------------------------------------------------
# pure-JAX reference (for a sanity check)
# ----------------------------------------------------------------------------
def residual_block_reference(x, params, activate="relu", eps=1e-5):
    slope = 0.0 if activate == "relu" else 0.01

    def bn(z, g, b, m, v):
        inv = g / jnp.sqrt(v + eps)
        return z * inv[None, :, None, None] + (b - m * inv)[None, :, None, None]

    def conv(z, w, b):
        o = lax.conv_general_dilated(z, w, (1, 1), ((1, 1), (1, 1)),
                                     dimension_numbers=("NCHW", "OIHW", "NCHW"))
        return o + b[None, :, None, None]

    act = lambda z: jnp.where(z > 0, z, slope * z)
    h = act(bn(x, params["g1"], params["be1"], params["m1"], params["v1"]))
    h = conv(h, params["w1"], params["b1"])
    h = act(bn(h, params["g2"], params["be2"], params["m2"], params["v2"]))
    h = conv(h, params["w2"], params["b2"])
    return x + h


# ----------------------------------------------------------------------------
if __name__ == "__main__":
    B, C, H, W = 2, 4, 16, 16
    Co = C   # ResidualBlock.forward requires input_dim == output_dim

    key = jax.random.PRNGKey(0)
    ks = jax.random.split(key, 13)
    params = {
        "w1": 0.1 * jax.random.normal(ks[0], (C, C, 3, 3), jnp.float32),
        "b1": 0.1 * jax.random.normal(ks[1], (C,), jnp.float32),
        "w2": 0.1 * jax.random.normal(ks[2], (Co, C, 3, 3), jnp.float32),
        "b2": 0.1 * jax.random.normal(ks[3], (Co,), jnp.float32),
        # BatchNorm1 (inference): gamma / beta / running_mean / running_var
        "g1": 1.0 + 0.1 * jax.random.normal(ks[4], (C,), jnp.float32),
        "be1": 0.1 * jax.random.normal(ks[5], (C,), jnp.float32),
        "m1": 0.1 * jax.random.normal(ks[6], (C,), jnp.float32),
        "v1": 1.0 + 0.1 * jnp.abs(jax.random.normal(ks[7], (C,), jnp.float32)),
        # BatchNorm2
        "g2": 1.0 + 0.1 * jax.random.normal(ks[8], (C,), jnp.float32),
        "be2": 0.1 * jax.random.normal(ks[9], (C,), jnp.float32),
        "m2": 0.1 * jax.random.normal(ks[10], (C,), jnp.float32),
        "v2": 1.0 + 0.1 * jnp.abs(jax.random.normal(ks[11], (C,), jnp.float32)),
    }
    x = jax.random.normal(ks[12], (B, C, H, W), jnp.float32)

    y = jax.jit(residual_block_forward)(x, params)
    y = jax.block_until_ready(y)

    y_ref = residual_block_reference(x, params)
    assert y.shape == (B, Co, H, W)
    max_err = float(jnp.max(jnp.abs(y - y_ref)))
    # bf16 MXU inputs with f32 accumulation -> relaxed (but still tight) bound
    assert max_err < 5e-2, f"mismatch vs reference: max abs err {max_err}"

    print("KERNEL_OK")
</pallas_src>

<mosaic_0001>
module attributes {stable_mosaic.version = 11 : i64} {
  func.func @kernel(%arg0: i32, %arg1: memref<1x4x256xf32, #tpu.memory_space<vmem>>, %arg2: memref<9x4x256xf32, #tpu.memory_space<vmem>>, %arg3: memref<9x4x4xbf16, #tpu.memory_space<vmem>>, %arg4: memref<9x4x4xbf16, #tpu.memory_space<vmem>>, %arg5: memref<4x1xf32, #tpu.memory_space<vmem>>, %arg6: memref<4x1xf32, #tpu.memory_space<vmem>>, %arg7: memref<4x1xf32, #tpu.memory_space<vmem>>, %arg8: memref<4x1xf32, #tpu.memory_space<vmem>>, %arg9: memref<4x1xf32, #tpu.memory_space<vmem>>, %arg10: memref<1x4x256xf32, #tpu.memory_space<vmem>>) attributes {dimension_semantics = [#tpu.dimension_semantics<parallel>], iteration_bounds = array<i64: 2>, scalar_prefetch = 0 : i64, scratch_operands = 0 : i64, tpu.core_type = #tpu.core_type<tc>, window_params = [{transform_indices = @transform_0, window_bounds = array<i64: 1, 4, 256>}, {pipeline_mode = #tpu.pipeline_mode<synchronous>, transform_indices = @transform_1, window_bounds = array<i64: 9, 4, 256>}, {pipeline_mode = #tpu.pipeline_mode<synchronous>, transform_indices = @transform_2, window_bounds = array<i64: 9, 4, 4>}, {pipeline_mode = #tpu.pipeline_mode<synchronous>, transform_indices = @transform_3, window_bounds = array<i64: 9, 4, 4>}, {pipeline_mode = #tpu.pipeline_mode<synchronous>, transform_indices = @transform_4, window_bounds = array<i64: 4, 1>}, {pipeline_mode = #tpu.pipeline_mode<synchronous>, transform_indices = @transform_5, window_bounds = array<i64: 4, 1>}, {pipeline_mode = #tpu.pipeline_mode<synchronous>, transform_indices = @transform_6, window_bounds = array<i64: 4, 1>}, {pipeline_mode = #tpu.pipeline_mode<synchronous>, transform_indices = @transform_7, window_bounds = array<i64: 4, 1>}, {pipeline_mode = #tpu.pipeline_mode<synchronous>, transform_indices = @transform_8, window_bounds = array<i64: 4, 1>}, {transform_indices = @transform_9, window_bounds = array<i64: 1, 4, 256>}]} {
    %c0 = arith.constant 0 : index
    %c0_0 = arith.constant 0 : index
    %c0_1 = arith.constant 0 : index
    %0 = vector.load %arg1[%c0, %c0_0, %c0_1] : memref<1x4x256xf32, #tpu.memory_space<vmem>>, vector<1x4x256xf32>
    %1 = vector.shape_cast %0 : vector<1x4x256xf32> to vector<4x256xf32>
    %c0_2 = arith.constant 0 : index
    %c0_3 = arith.constant 0 : index
    %2 = vector.load %arg5[%c0_2, %c0_3] : memref<4x1xf32, #tpu.memory_space<vmem>>, vector<4x1xf32>
    %3 = vector.broadcast %2 : vector<4x1xf32> to vector<4x256xf32>
    %4 = arith.mulf %3, %1 : vector<4x256xf32>
    %c0_4 = arith.constant 0 : index
    %c0_5 = arith.constant 0 : index
    %5 = vector.load %arg6[%c0_4, %c0_5] : memref<4x1xf32, #tpu.memory_space<vmem>>, vector<4x1xf32>
    %6 = vector.broadcast %5 : vector<4x1xf32> to vector<4x256xf32>
    %7 = arith.addf %4, %6 : vector<4x256xf32>
    %cst = arith.constant 0.000000e+00 : f32
    %8 = vector.broadcast %cst : f32 to vector<4x256xf32>
    %9 = arith.cmpf ogt, %7, %8 : vector<4x256xf32>
    %cst_6 = arith.constant 0.000000e+00 : f32
    %10 = vector.broadcast %cst_6 : f32 to vector<4x256xf32>
    %11 = arith.mulf %10, %7 : vector<4x256xf32>
    %12 = arith.select %9, %7, %11 : vector<4x256xi1>, vector<4x256xf32>
    %c17_i32 = arith.constant 17 : i32
    %13 = tpu.dynamic_rotate %12 by %c17_i32 dim 1 : vector<4x256xf32>, i32 -> vector<4x256xf32>
    %c0_7 = arith.constant 0 : index
    %c0_8 = arith.constant 0 : index
    %c0_9 = arith.constant 0 : index
    %14 = vector.load %arg2[%c0_7, %c0_8, %c0_9] : memref<9x4x256xf32, #tpu.memory_space<vmem>>, vector<1x4x256xf32>
    %15 = vector.shape_cast %14 : vector<1x4x256xf32> to vector<4x256xf32>
    %16 = arith.mulf %13, %15 : vector<4x256xf32>
    %17 = arith.truncf %16 : vector<4x256xf32> to vector<4x256xbf16>
    %c0_10 = arith.constant 0 : index
    %c0_11 = arith.constant 0 : index
    %c0_12 = arith.constant 0 : index
    %18 = vector.load %arg3[%c0_10, %c0_11, %c0_12] : memref<9x4x4xbf16, #tpu.memory_space<vmem>>, vector<1x4x4xbf16>
    %19 = vector.shape_cast %18 : vector<1x4x4xbf16> to vector<4x4xbf16>
    %cst_13 = arith.constant dense<0.000000e+00> : vector<4x256xf32>
    %20 = tpu.matmul %19, %17, %cst_13 {dimension_numbers = #tpu.dot_dimension_numbers<[1], [0], [0], [1], [0, 0, 1, 1], [], []>} : vector<4x4xbf16>, vector<4x256xbf16>, vector<4x256xf32> -> vector<4x256xf32>
    %c16_i32 = arith.constant 16 : i32
    %21 = tpu.dynamic_rotate %12 by %c16_i32 dim 1 : vector<4x256xf32>, i32 -> vector<4x256xf32>
    %c1 = arith.constant 1 : index
    %c0_14 = arith.constant 0 : index
    %c0_15 = arith.constant 0 : index
    %22 = vector.load %arg2[%c1, %c0_14, %c0_15] : memref<9x4x256xf32, #tpu.memory_space<vmem>>, vector<1x4x256xf32>
    %23 = vector.shape_cast %22 : vector<1x4x256xf32> to vector<4x256xf32>
    %24 = arith.mulf %21, %23 : vector<4x256xf32>
    %25 = arith.truncf %24 : vector<4x256xf32> to vector<4x256xbf16>
    %c1_16 = arith.constant 1 : index
    %c0_17 = arith.constant 0 : index
    %c0_18 = arith.constant 0 : index
    %26 = vector.load %arg3[%c1_16, %c0_17, %c0_18] : memref<9x4x4xbf16, #tpu.memory_space<vmem>>, vector<1x4x4xbf16>
    %27 = vector.shape_cast %26 : vector<1x4x4xbf16> to vector<4x4xbf16>
    %cst_19 = arith.constant dense<0.000000e+00> : vector<4x256xf32>
    %28 = tpu.matmul %27, %25, %cst_19 {dimension_numbers = #tpu.dot_dimension_numbers<[1], [0], [0], [1], [0, 0, 1, 1], [], []>} : vector<4x4xbf16>, vector<4x256xbf16>, vector<4x256xf32> -> vector<4x256xf32>
    %29 = arith.addf %20, %28 : vector<4x256xf32>
    %c15_i32 = arith.constant 15 : i32
    %30 = tpu.dynamic_rotate %12 by %c15_i32 dim 1 : vector<4x256xf32>, i32 -> vector<4x256xf32>
    %c2 = arith.constant 2 : index
    %c0_20 = arith.constant 0 : index
    %c0_21 = arith.constant 0 : index
    %31 = vector.load %arg2[%c2, %c0_20, %c0_21] : memref<9x4x256xf32, #tpu.memory_space<vmem>>, vector<1x4x256xf32>
    %32 = vector.shape_cast %31 : vector<1x4x256xf32> to vector<4x256xf32>
    %33 = arith.mulf %30, %32 : vector<4x256xf32>
    %34 = arith.truncf %33 : vector<4x256xf32> to vector<4x256xbf16>
    %c2_22 = arith.constant 2 : index
    %c0_23 = arith.constant 0 : index
    %c0_24 = arith.constant 0 : index
    %35 = vector.load %arg3[%c2_22, %c0_23, %c0_24] : memref<9x4x4xbf16, #tpu.memory_space<vmem>>, vector<1x4x4xbf16>
    %36 = vector.shape_cast %35 : vector<1x4x4xbf16> to vector<4x4xbf16>
    %cst_25 = arith.constant dense<0.000000e+00> : vector<4x256xf32>
    %37 = tpu.matmul %36, %34, %cst_25 {dimension_numbers = #tpu.dot_dimension_numbers<[1], [0], [0], [1], [0, 0, 1, 1], [], []>} : vector<4x4xbf16>, vector<4x256xbf16>, vector<4x256xf32> -> vector<4x256xf32>
    %38 = arith.addf %29, %37 : vector<4x256xf32>
    %c1_i32 = arith.constant 1 : i32
    %39 = tpu.dynamic_rotate %12 by %c1_i32 dim 1 : vector<4x256xf32>, i32 -> vector<4x256xf32>
    %c3 = arith.constant 3 : index
    %c0_26 = arith.constant 0 : index
    %c0_27 = arith.constant 0 : index
    %40 = vector.load %arg2[%c3, %c0_26, %c0_27] : memref<9x4x256xf32, #tpu.memory_space<vmem>>, vector<1x4x256xf32>
    %41 = vector.shape_cast %40 : vector<1x4x256xf32> to vector<4x256xf32>
    %42 = arith.mulf %39, %41 : vector<4x256xf32>
    %43 = arith.truncf %42 : vector<4x256xf32> to vector<4x256xbf16>
    %c3_28 = arith.constant 3 : index
    %c0_29 = arith.constant 0 : index
    %c0_30 = arith.constant 0 : index
    %44 = vector.load %arg3[%c3_28, %c0_29, %c0_30] : memref<9x4x4xbf16, #tpu.memory_space<vmem>>, vector<1x4x4xbf16>
    %45 = vector.shape_cast %44 : vector<1x4x4xbf16> to vector<4x4xbf16>
    %cst_31 = arith.constant dense<0.000000e+00> : vector<4x256xf32>
    %46 = tpu.matmul %45, %43, %cst_31 {dimension_numbers = #tpu.dot_dimension_numbers<[1], [0], [0], [1], [0, 0, 1, 1], [], []>} : vector<4x4xbf16>, vector<4x256xbf16>, vector<4x256xf32> -> vector<4x256xf32>
    %47 = arith.addf %38, %46 : vector<4x256xf32>
    %c4 = arith.constant 4 : index
    %c0_32 = arith.constant 0 : index
    %c0_33 = arith.constant 0 : index
    %48 = vector.load %arg2[%c4, %c0_32, %c0_33] : memref<9x4x256xf32, #tpu.memory_space<vmem>>, vector<1x4x256xf32>
    %49 = vector.shape_cast %48 : vector<1x4x256xf32> to vector<4x256xf32>
    %50 = arith.mulf %12, %49 : vector<4x256xf32>
    %51 = arith.truncf %50 : vector<4x256xf32> to vector<4x256xbf16>
    %c4_34 = arith.constant 4 : index
    %c0_35 = arith.constant 0 : index
    %c0_36 = arith.constant 0 : index
    %52 = vector.load %arg3[%c4_34, %c0_35, %c0_36] : memref<9x4x4xbf16, #tpu.memory_space<vmem>>, vector<1x4x4xbf16>
    %53 = vector.shape_cast %52 : vector<1x4x4xbf16> to vector<4x4xbf16>
    %cst_37 = arith.constant dense<0.000000e+00> : vector<4x256xf32>
    %54 = tpu.matmul %53, %51, %cst_37 {dimension_numbers = #tpu.dot_dimension_numbers<[1], [0], [0], [1], [0, 0, 1, 1], [], []>} : vector<4x4xbf16>, vector<4x256xbf16>, vector<4x256xf32> -> vector<4x256xf32>
    %55 = arith.addf %47, %54 : vector<4x256xf32>
    %c255_i32 = arith.constant 255 : i32
    %56 = tpu.dynamic_rotate %12 by %c255_i32 dim 1 : vector<4x256xf32>, i32 -> vector<4x256xf32>
    %c5 = arith.constant 5 : index
    %c0_38 = arith.constant 0 : index
    %c0_39 = arith.constant 0 : index
    %57 = vector.load %arg2[%c5, %c0_38, %c0_39] : memref<9x4x256xf32, #tpu.memory_space<vmem>>, vector<1x4x256xf32>
    %58 = vector.shape_cast %57 : vector<1x4x256xf32> to vector<4x256xf32>
    %59 = arith.mulf %56, %58 : vector<4x256xf32>
    %60 = arith.truncf %59 : vector<4x256xf32> to vector<4x256xbf16>
    %c5_40 = arith.constant 5 : index
    %c0_41 = arith.constant 0 : index
    %c0_42 = arith.constant 0 : index
    %61 = vector.load %arg3[%c5_40, %c0_41, %c0_42] : memref<9x4x4xbf16, #tpu.memory_space<vmem>>, vector<1x4x4xbf16>
    %62 = vector.shape_cast %61 : vector<1x4x4xbf16> to vector<4x4xbf16>
    %cst_43 = arith.constant dense<0.000000e+00> : vector<4x256xf32>
    %63 = tpu.matmul %62, %60, %cst_43 {dimension_numbers = #tpu.dot_dimension_numbers<[1], [0], [0], [1], [0, 0, 1, 1], [], []>} : vector<4x4xbf16>, vector<4x256xbf16>, vector<4x256xf32> -> vector<4x256xf32>
    %64 = arith.addf %55, %63 : vector<4x256xf32>
    %c241_i32 = arith.constant 241 : i32
    %65 = tpu.dynamic_rotate %12 by %c241_i32 dim 1 : vector<4x256xf32>, i32 -> vector<4x256xf32>
    %c6 = arith.constant 6 : index
    %c0_44 = arith.constant 0 : index
    %c0_45 = arith.constant 0 : index
    %66 = vector.load %arg2[%c6, %c0_44, %c0_45] : memref<9x4x256xf32, #tpu.memory_space<vmem>>, vector<1x4x256xf32>
    %67 = vector.shape_cast %66 : vector<1x4x256xf32> to vector<4x256xf32>
    %68 = arith.mulf %65, %67 : vector<4x256xf32>
    %69 = arith.truncf %68 : vector<4x256xf32> to vector<4x256xbf16>
    %c6_46 = arith.constant 6 : index
    %c0_47 = arith.constant 0 : index
    %c0_48 = arith.constant 0 : index
    %70 = vector.load %arg3[%c6_46, %c0_47, %c0_48] : memref<9x4x4xbf16, #tpu.memory_space<vmem>>, vector<1x4x4xbf16>
    %71 = vector.shape_cast %70 : vector<1x4x4xbf16> to vector<4x4xbf16>
    %cst_49 = arith.constant dense<0.000000e+00> : vector<4x256xf32>
    %72 = tpu.matmul %71, %69, %cst_49 {dimension_numbers = #tpu.dot_dimension_numbers<[1], [0], [0], [1], [0, 0, 1, 1], [], []>} : vector<4x4xbf16>, vector<4x256xbf16>, vector<4x256xf32> -> vector<4x256xf32>
    %73 = arith.addf %64, %72 : vector<4x256xf32>
    %c240_i32 = arith.constant 240 : i32
    %74 = tpu.dynamic_rotate %12 by %c240_i32 dim 1 : vector<4x256xf32>, i32 -> vector<4x256xf32>
    %c7 = arith.constant 7 : index
    %c0_50 = arith.constant 0 : index
    %c0_51 = arith.constant 0 : index
    %75 = vector.load %arg2[%c7, %c0_50, %c0_51] : memref<9x4x256xf32, #tpu.memory_space<vmem>>, vector<1x4x256xf32>
    %76 = vector.shape_cast %75 : vector<1x4x256xf32> to vector<4x256xf32>
    %77 = arith.mulf %74, %76 : vector<4x256xf32>
    %78 = arith.truncf %77 : vector<4x256xf32> to vector<4x256xbf16>
    %c7_52 = arith.constant 7 : index
    %c0_53 = arith.constant 0 : index
    %c0_54 = arith.constant 0 : index
    %79 = vector.load %arg3[%c7_52, %c0_53, %c0_54] : memref<9x4x4xbf16, #tpu.memory_space<vmem>>, vector<1x4x4xbf16>
    %80 = vector.shape_cast %79 : vector<1x4x4xbf16> to vector<4x4xbf16>
    %cst_55 = arith.constant dense<0.000000e+00> : vector<4x256xf32>
    %81 = tpu.matmul %80, %78, %cst_55 {dimension_numbers = #tpu.dot_dimension_numbers<[1], [0], [0], [1], [0, 0, 1, 1], [], []>} : vector<4x4xbf16>, vector<4x256xbf16>, vector<4x256xf32> -> vector<4x256xf32>
    %82 = arith.addf %73, %81 : vector<4x256xf32>
    %c239_i32 = arith.constant 239 : i32
    %83 = tpu.dynamic_rotate %12 by %c239_i32 dim 1 : vector<4x256xf32>, i32 -> vector<4x256xf32>
    %c8 = arith.constant 8 : index
    %c0_56 = arith.constant 0 : index
    %c0_57 = arith.constant 0 : index
    %84 = vector.load %arg2[%c8, %c0_56, %c0_57] : memref<9x4x256xf32, #tpu.memory_space<vmem>>, vector<1x4x256xf32>
    %85 = vector.shape_cast %84 : vector<1x4x256xf32> to vector<4x256xf32>
    %86 = arith.mulf %83, %85 : vector<4x256xf32>
    %87 = arith.truncf %86 : vector<4x256xf32> to vector<4x256xbf16>
    %c8_58 = arith.constant 8 : index
    %c0_59 = arith.constant 0 : index
    %c0_60 = arith.constant 0 : index
    %88 = vector.load %arg3[%c8_58, %c0_59, %c0_60] : memref<9x4x4xbf16, #tpu.memory_space<vmem>>, vector<1x4x4xbf16>
    %89 = vector.shape_cast %88 : vector<1x4x4xbf16> to vector<4x4xbf16>
    %cst_61 = arith.constant dense<0.000000e+00> : vector<4x256xf32>
    %90 = tpu.matmul %89, %87, %cst_61 {dimension_numbers = #tpu.dot_dimension_numbers<[1], [0], [0], [1], [0, 0, 1, 1], [], []>} : vector<4x4xbf16>, vector<4x256xbf16>, vector<4x256xf32> -> vector<4x256xf32>
    %91 = arith.addf %82, %90 : vector<4x256xf32>
    %c0_62 = arith.constant 0 : index
    %c0_63 = arith.constant 0 : index
    %92 = vector.load %arg7[%c0_62, %c0_63] : memref<4x1xf32, #tpu.memory_space<vmem>>, vector<4x1xf32>
    %93 = vector.broadcast %92 : vector<4x1xf32> to vector<4x256xf32>
    %94 = arith.mulf %93, %91 : vector<4x256xf32>
    %c0_64 = arith.constant 0 : index
    %c0_65 = arith.constant 0 : index
    %95 = vector.load %arg8[%c0_64, %c0_65] : memref<4x1xf32, #tpu.memory_space<vmem>>, vector<4x1xf32>
    %96 = vector.broadcast %95 : vector<4x1xf32> to vector<4x256xf32>
    %97 = arith.addf %94, %96 : vector<4x256xf32>
    %cst_66 = arith.constant 0.000000e+00 : f32
    %98 = vector.broadcast %cst_66 : f32 to vector<4x256xf32>
    %99 = arith.cmpf ogt, %97, %98 : vector<4x256xf32>
    %cst_67 = arith.constant 0.000000e+00 : f32
    %100 = vector.broadcast %cst_67 : f32 to vector<4x256xf32>
    %101 = arith.mulf %100, %97 : vector<4x256xf32>
    %102 = arith.select %99, %97, %101 : vector<4x256xi1>, vector<4x256xf32>
    %c17_i32_68 = arith.constant 17 : i32
    %103 = tpu.dynamic_rotate %102 by %c17_i32_68 dim 1 : vector<4x256xf32>, i32 -> vector<4x256xf32>
    %c0_69 = arith.constant 0 : index
    %c0_70 = arith.constant 0 : index
    %c0_71 = arith.constant 0 : index
    %104 = vector.load %arg2[%c0_69, %c0_70, %c0_71] : memref<9x4x256xf32, #tpu.memory_space<vmem>>, vector<1x4x256xf32>
    %105 = vector.shape_cast %104 : vector<1x4x256xf32> to vector<4x256xf32>
    %106 = arith.mulf %103, %105 : vector<4x256xf32>
    %107 = arith.truncf %106 : vector<4x256xf32> to vector<4x256xbf16>
    %c0_72 = arith.constant 0 : index
    %c0_73 = arith.constant 0 : index
    %c0_74 = arith.constant 0 : index
    %108 = vector.load %arg4[%c0_72, %c0_73, %c0_74] : memref<9x4x4xbf16, #tpu.memory_space<vmem>>, vector<1x4x4xbf16>
    %109 = vector.shape_cast %108 : vector<1x4x4xbf16> to vector<4x4xbf16>
    %cst_75 = arith.constant dense<0.000000e+00> : vector<4x256xf32>
    %110 = tpu.matmul %109, %107, %cst_75 {dimension_numbers = #tpu.dot_dimension_numbers<[1], [0], [0], [1], [0, 0, 1, 1], [], []>} : vector<4x4xbf16>, vector<4x256xbf16>, vector<4x256xf32> -> vector<4x256xf32>
    %c16_i32_76 = arith.constant 16 : i32
    %111 = tpu.dynamic_rotate %102 by %c16_i32_76 dim 1 : vector<4x256xf32>, i32 -> vector<4x256xf32>
    %c1_77 = arith.constant 1 : index
    %c0_78 = arith.constant 0 : index
    %c0_79 = arith.constant 0 : index
    %112 = vector.load %arg2[%c1_77, %c0_78, %c0_79] : memref<9x4x256xf32, #tpu.memory_space<vmem>>, vector<1x4x256xf32>
    %113 = vector.shape_cast %112 : vector<1x4x256xf32> to vector<4x256xf32>
    %114 = arith.mulf %111, %113 : vector<4x256xf32>
    %115 = arith.truncf %114 : vector<4x256xf32> to vector<4x256xbf16>
    %c1_80 = arith.constant 1 : index
    %c0_81 = arith.constant 0 : index
    %c0_82 = arith.constant 0 : index
    %116 = vector.load %arg4[%c1_80, %c0_81, %c0_82] : memref<9x4x4xbf16, #tpu.memory_space<vmem>>, vector<1x4x4xbf16>
    %117 = vector.shape_cast %116 : vector<1x4x4xbf16> to vector<4x4xbf16>
    %cst_83 = arith.constant dense<0.000000e+00> : vector<4x256xf32>
    %118 = tpu.matmul %117, %115, %cst_83 {dimension_numbers = #tpu.dot_dimension_numbers<[1], [0], [0], [1], [0, 0, 1, 1], [], []>} : vector<4x4xbf16>, vector<4x256xbf16>, vector<4x256xf32> -> vector<4x256xf32>
    %119 = arith.addf %110, %118 : vector<4x256xf32>
    %c15_i32_84 = arith.constant 15 : i32
    %120 = tpu.dynamic_rotate %102 by %c15_i32_84 dim 1 : vector<4x256xf32>, i32 -> vector<4x256xf32>
    %c2_85 = arith.constant 2 : index
    %c0_86 = arith.constant 0 : index
    %c0_87 = arith.constant 0 : index
    %121 = vector.load %arg2[%c2_85, %c0_86, %c0_87] : memref<9x4x256xf32, #tpu.memory_space<vmem>>, vector<1x4x256xf32>
    %122 = vector.shape_cast %121 : vector<1x4x256xf32> to vector<4x256xf32>
    %123 = arith.mulf %120, %122 : vector<4x256xf32>
    %124 = arith.truncf %123 : vector<4x256xf32> to vector<4x256xbf16>
    %c2_88 = arith.constant 2 : index
    %c0_89 = arith.constant 0 : index
    %c0_90 = arith.constant 0 : index
    %125 = vector.load %arg4[%c2_88, %c0_89, %c0_90] : memref<9x4x4xbf16, #tpu.memory_space<vmem>>, vector<1x4x4xbf16>
    %126 = vector.shape_cast %125 : vector<1x4x4xbf16> to vector<4x4xbf16>
    %cst_91 = arith.constant dense<0.000000e+00> : vector<4x256xf32>
    %127 = tpu.matmul %126, %124, %cst_91 {dimension_numbers = #tpu.dot_dimension_numbers<[1], [0], [0], [1], [0, 0, 1, 1], [], []>} : vector<4x4xbf16>, vector<4x256xbf16>, vector<4x256xf32> -> vector<4x256xf32>
    %128 = arith.addf %119, %127 : vector<4x256xf32>
    %c1_i32_92 = arith.constant 1 : i32
    %129 = tpu.dynamic_rotate %102 by %c1_i32_92 dim 1 : vector<4x256xf32>, i32 -> vector<4x256xf32>
    %c3_93 = arith.constant 3 : index
    %c0_94 = arith.constant 0 : index
    %c0_95 = arith.constant 0 : index
    %130 = vector.load %arg2[%c3_93, %c0_94, %c0_95] : memref<9x4x256xf32, #tpu.memory_space<vmem>>, vector<1x4x256xf32>
    %131 = vector.shape_cast %130 : vector<1x4x256xf32> to vector<4x256xf32>
    %132 = arith.mulf %129, %131 : vector<4x256xf32>
    %133 = arith.truncf %132 : vector<4x256xf32> to vector<4x256xbf16>
    %c3_96 = arith.constant 3 : index
    %c0_97 = arith.constant 0 : index
    %c0_98 = arith.constant 0 : index
    %134 = vector.load %arg4[%c3_96, %c0_97, %c0_98] : memref<9x4x4xbf16, #tpu.memory_space<vmem>>, vector<1x4x4xbf16>
    %135 = vector.shape_cast %134 : vector<1x4x4xbf16> to vector<4x4xbf16>
    %cst_99 = arith.constant dense<0.000000e+00> : vector<4x256xf32>
    %136 = tpu.matmul %135, %133, %cst_99 {dimension_numbers = #tpu.dot_dimension_numbers<[1], [0], [0], [1], [0, 0, 1, 1], [], []>} : vector<4x4xbf16>, vector<4x256xbf16>, vector<4x256xf32> -> vector<4x256xf32>
    %137 = arith.addf %128, %136 : vector<4x256xf32>
    %c4_100 = arith.constant 4 : index
    %c0_101 = arith.constant 0 : index
    %c0_102 = arith.constant 0 : index
    %138 = vector.load %arg2[%c4_100, %c0_101, %c0_102] : memref<9x4x256xf32, #tpu.memory_space<vmem>>, vector<1x4x256xf32>
    %139 = vector.shape_cast %138 : vector<1x4x256xf32> to vector<4x256xf32>
    %140 = arith.mulf %102, %139 : vector<4x256xf32>
    %141 = arith.truncf %140 : vector<4x256xf32> to vector<4x256xbf16>
    %c4_103 = arith.constant 4 : index
    %c0_104 = arith.constant 0 : index
    %c0_105 = arith.constant 0 : index
    %142 = vector.load %arg4[%c4_103, %c0_104, %c0_105] : memref<9x4x4xbf16, #tpu.memory_space<vmem>>, vector<1x4x4xbf16>
    %143 = vector.shape_cast %142 : vector<1x4x4xbf16> to vector<4x4xbf16>
    %cst_106 = arith.constant dense<0.000000e+00> : vector<4x256xf32>
    %144 = tpu.matmul %143, %141, %cst_106 {dimension_numbers = #tpu.dot_dimension_numbers<[1], [0], [0], [1], [0, 0, 1, 1], [], []>} : vector<4x4xbf16>, vector<4x256xbf16>, vector<4x256xf32> -> vector<4x256xf32>
    %145 = arith.addf %137, %144 : vector<4x256xf32>
    %c255_i32_107 = arith.constant 255 : i32
    %146 = tpu.dynamic_rotate %102 by %c255_i32_107 dim 1 : vector<4x256xf32>, i32 -> vector<4x256xf32>
    %c5_108 = arith.constant 5 : index
    %c0_109 = arith.constant 0 : index
    %c0_110 = arith.constant 0 : index
    %147 = vector.load %arg2[%c5_108, %c0_109, %c0_110] : memref<9x4x256xf32, #tpu.memory_space<vmem>>, vector<1x4x256xf32>
    %148 = vector.shape_cast %147 : vector<1x4x256xf32> to vector<4x256xf32>
    %149 = arith.mulf %146, %148 : vector<4x256xf32>
    %150 = arith.truncf %149 : vector<4x256xf32> to vector<4x256xbf16>
    %c5_111 = arith.constant 5 : index
    %c0_112 = arith.constant 0 : index
    %c0_113 = arith.constant 0 : index
    %151 = vector.load %arg4[%c5_111, %c0_112, %c0_113] : memref<9x4x4xbf16, #tpu.memory_space<vmem>>, vector<1x4x4xbf16>
    %152 = vector.shape_cast %151 : vector<1x4x4xbf16> to vector<4x4xbf16>
    %cst_114 = arith.constant dense<0.000000e+00> : vector<4x256xf32>
    %153 = tpu.matmul %152, %150, %cst_114 {dimension_numbers = #tpu.dot_dimension_numbers<[1], [0], [0], [1], [0, 0, 1, 1], [], []>} : vector<4x4xbf16>, vector<4x256xbf16>, vector<4x256xf32> -> vector<4x256xf32>
    %154 = arith.addf %145, %153 : vector<4x256xf32>
    %c241_i32_115 = arith.constant 241 : i32
    %155 = tpu.dynamic_rotate %102 by %c241_i32_115 dim 1 : vector<4x256xf32>, i32 -> vector<4x256xf32>
    %c6_116 = arith.constant 6 : index
    %c0_117 = arith.constant 0 : index
    %c0_118 = arith.constant 0 : index
    %156 = vector.load %arg2[%c6_116, %c0_117, %c0_118] : memref<9x4x256xf32, #tpu.memory_space<vmem>>, vector<1x4x256xf32>
    %157 = vector.shape_cast %156 : vector<1x4x256xf32> to vector<4x256xf32>
    %158 = arith.mulf %155, %157 : vector<4x256xf32>
    %159 = arith.truncf %158 : vector<4x256xf32> to vector<4x256xbf16>
    %c6_119 = arith.constant 6 : index
    %c0_120 = arith.constant 0 : index
    %c0_121 = arith.constant 0 : index
    %160 = vector.load %arg4[%c6_119, %c0_120, %c0_121] : memref<9x4x4xbf16, #tpu.memory_space<vmem>>, vector<1x4x4xbf16>
    %161 = vector.shape_cast %160 : vector<1x4x4xbf16> to vector<4x4xbf16>
    %cst_122 = arith.constant dense<0.000000e+00> : vector<4x256xf32>
    %162 = tpu.matmul %161, %159, %cst_122 {dimension_numbers = #tpu.dot_dimension_numbers<[1], [0], [0], [1], [0, 0, 1, 1], [], []>} : vector<4x4xbf16>, vector<4x256xbf16>, vector<4x256xf32> -> vector<4x256xf32>
    %163 = arith.addf %154, %162 : vector<4x256xf32>
    %c240_i32_123 = arith.constant 240 : i32
    %164 = tpu.dynamic_rotate %102 by %c240_i32_123 dim 1 : vector<4x256xf32>, i32 -> vector<4x256xf32>
    %c7_124 = arith.constant 7 : index
    %c0_125 = arith.constant 0 : index
    %c0_126 = arith.constant 0 : index
    %165 = vector.load %arg2[%c7_124, %c0_125, %c0_126] : memref<9x4x256xf32, #tpu.memory_space<vmem>>, vector<1x4x256xf32>
    %166 = vector.shape_cast %165 : vector<1x4x256xf32> to vector<4x256xf32>
    %167 = arith.mulf %164, %166 : vector<4x256xf32>
    %168 = arith.truncf %167 : vector<4x256xf32> to vector<4x256xbf16>
    %c7_127 = arith.constant 7 : index
    %c0_128 = arith.constant 0 : index
    %c0_129 = arith.constant 0 : index
    %169 = vector.load %arg4[%c7_127, %c0_128, %c0_129] : memref<9x4x4xbf16, #tpu.memory_space<vmem>>, vector<1x4x4xbf16>
    %170 = vector.shape_cast %169 : vector<1x4x4xbf16> to vector<4x4xbf16>
    %cst_130 = arith.constant dense<0.000000e+00> : vector<4x256xf32>
    %171 = tpu.matmul %170, %168, %cst_130 {dimension_numbers = #tpu.dot_dimension_numbers<[1], [0], [0], [1], [0, 0, 1, 1], [], []>} : vector<4x4xbf16>, vector<4x256xbf16>, vector<4x256xf32> -> vector<4x256xf32>
    %172 = arith.addf %163, %171 : vector<4x256xf32>
    %c239_i32_131 = arith.constant 239 : i32
    %173 = tpu.dynamic_rotate %102 by %c239_i32_131 dim 1 : vector<4x256xf32>, i32 -> vector<4x256xf32>
    %c8_132 = arith.constant 8 : index
    %c0_133 = arith.constant 0 : index
    %c0_134 = arith.constant 0 : index
    %174 = vector.load %arg2[%c8_132, %c0_133, %c0_134] : memref<9x4x256xf32, #tpu.memory_space<vmem>>, vector<1x4x256xf32>
    %175 = vector.shape_cast %174 : vector<1x4x256xf32> to vector<4x256xf32>
    %176 = arith.mulf %173, %175 : vector<4x256xf32>
    %177 = arith.truncf %176 : vector<4x256xf32> to vector<4x256xbf16>
    %c8_135 = arith.constant 8 : index
    %c0_136 = arith.constant 0 : index
    %c0_137 = arith.constant 0 : index
    %178 = vector.load %arg4[%c8_135, %c0_136, %c0_137] : memref<9x4x4xbf16, #tpu.memory_space<vmem>>, vector<1x4x4xbf16>
    %179 = vector.shape_cast %178 : vector<1x4x4xbf16> to vector<4x4xbf16>
    %cst_138 = arith.constant dense<0.000000e+00> : vector<4x256xf32>
    %180 = tpu.matmul %179, %177, %cst_138 {dimension_numbers = #tpu.dot_dimension_numbers<[1], [0], [0], [1], [0, 0, 1, 1], [], []>} : vector<4x4xbf16>, vector<4x256xbf16>, vector<4x256xf32> -> vector<4x256xf32>
    %181 = arith.addf %172, %180 : vector<4x256xf32>
    %182 = arith.addf %1, %181 : vector<4x256xf32>
    %c0_139 = arith.constant 0 : index
    %c0_140 = arith.constant 0 : index
    %183 = vector.load %arg9[%c0_139, %c0_140] : memref<4x1xf32, #tpu.memory_space<vmem>>, vector<4x1xf32>
    %184 = vector.broadcast %183 : vector<4x1xf32> to vector<4x256xf32>
    %185 = arith.addf %182, %184 : vector<4x256xf32>
    %c0_141 = arith.constant 0 : index
    %c0_142 = arith.constant 0 : index
    %c0_143 = arith.constant 0 : index
    %186 = vector.load %arg10[%c0_141, %c0_142, %c0_143] : memref<1x4x256xf32, #tpu.memory_space<vmem>>, vector<1x4x256xf32>
    %187 = vector.shape_cast %186 : vector<1x4x256xf32> to vector<4x256xf32>
    %188 = vector.shape_cast %185 : vector<4x256xf32> to vector<1x4x256xf32>
    tpu.vector_store %arg10[%c0_141, %c0_142, %c0_143], %188 {strides = array<i32>} : memref<1x4x256xf32, #tpu.memory_space<vmem>>, vector<1x4x256xf32>,
    return
  }
  func.func @transform_0(%arg0: i32) -> (i32, i32, i32) {
    %c0_i32 = arith.constant 0 : i32
    %c0_i32_0 = arith.constant 0 : i32
    %c0_i32_1 = arith.constant 0 : i32
    return %arg0, %c0_i32, %c0_i32_0 : i32, i32, i32
  }
  func.func @transform_1(%arg0: i32) -> (i32, i32, i32) {
    %c0_i32 = arith.constant 0 : i32
    %c0_i32_0 = arith.constant 0 : i32
    %c0_i32_1 = arith.constant 0 : i32
    %c0_i32_2 = arith.constant 0 : i32
    return %c0_i32, %c0_i32_0, %c0_i32_1 : i32, i32, i32
  }
  func.func @transform_2(%arg0: i32) -> (i32, i32, i32) {
    %c0_i32 = arith.constant 0 : i32
    %c0_i32_0 = arith.constant 0 : i32
    %c0_i32_1 = arith.constant 0 : i32
    %c0_i32_2 = arith.constant 0 : i32
    return %c0_i32, %c0_i32_0, %c0_i32_1 : i32, i32, i32
  }
  func.func @transform_3(%arg0: i32) -> (i32, i32, i32) {
    %c0_i32 = arith.constant 0 : i32
    %c0_i32_0 = arith.constant 0 : i32
    %c0_i32_1 = arith.constant 0 : i32
    %c0_i32_2 = arith.constant 0 : i32
    return %c0_i32, %c0_i32_0, %c0_i32_1 : i32, i32, i32
  }
  func.func @transform_4(%arg0: i32) -> (i32, i32) {
    %c0_i32 = arith.constant 0 : i32
    %c0_i32_0 = arith.constant 0 : i32
    %c0_i32_1 = arith.constant 0 : i32
    return %c0_i32, %c0_i32_0 : i32, i32
  }
  func.func @transform_5(%arg0: i32) -> (i32, i32) {
    %c0_i32 = arith.constant 0 : i32
    %c0_i32_0 = arith.constant 0 : i32
    %c0_i32_1 = arith.constant 0 : i32
    return %c0_i32, %c0_i32_0 : i32, i32
  }
  func.func @transform_6(%arg0: i32) -> (i32, i32) {
    %c0_i32 = arith.constant 0 : i32
    %c0_i32_0 = arith.constant 0 : i32
    %c0_i32_1 = arith.constant 0 : i32
    return %c0_i32, %c0_i32_0 : i32, i32
  }
  func.func @transform_7(%arg0: i32) -> (i32, i32) {
    %c0_i32 = arith.constant 0 : i32
    %c0_i32_0 = arith.constant 0 : i32
    %c0_i32_1 = arith.constant 0 : i32
    return %c0_i32, %c0_i32_0 : i32, i32
  }
  func.func @transform_8(%arg0: i32) -> (i32, i32) {
    %c0_i32 = arith.constant 0 : i32
    %c0_i32_0 = arith.constant 0 : i32
    %c0_i32_1 = arith.constant 0 : i32
    return %c0_i32, %c0_i32_0 : i32, i32
  }
  func.func @transform_9(%arg0: i32) -> (i32, i32, i32) {
    %c0_i32 = arith.constant 0 : i32
    %c0_i32_0 = arith.constant 0 : i32
    %c0_i32_1 = arith.constant 0 : i32
    return %arg0, %c0_i32, %c0_i32_0 : i32, i32, i32
  }
}

</mosaic_0001>

<bundles_post_ra>
// kernel: residual_block_forward.1
= control target key start
LH: loop header
LB: loop body
LE: loop exit
PB: predicated region body
PF: predicated region fallthrough
CT: control target
= control target key end

     0   :  { %s1814_s30 = smov 0   ;;  %s2234_s0 = inlined_call_operand.vmem [shape: f32[2,4,256], index: 0, kind: input, shape index: {}]   ;;  %s2235_s1 = inlined_call_operand.vmem [shape: f32[9,4,256], index: 1, kind: input, shape index: {}]   ;;  %s2236_s2 = inlined_call_operand.vmem [shape: bf16[9,4,4], index: 2, kind: input, shape index: {}]   ;;  %s2237_s3 = inlined_call_operand.vmem [shape: bf16[9,4,4], index: 3, kind: input, shape index: {}]   ;;  %s2238_s4 = inlined_call_operand.vmem [shape: f32[4,1], index: 4, kind: input, shape index: {}]   ;;  %s2239_s5 = inlined_call_operand.vmem [shape: f32[4,1], index: 5, kind: input, shape index: {}]   ;;  %s2240_s6 = inlined_call_operand.vmem [shape: f32[4,1], index: 6, kind: input, shape index: {}]   ;;  %s2241_s7 = inlined_call_operand.vmem [shape: f32[4,1], index: 7, kind: input, shape index: {}]   ;;  %s2242_s8 = inlined_call_operand.vmem [shape: f32[4,1], index: 8, kind: input, shape index: {}]   ;;  %s2243_s9 = inlined_call_operand.vmem [shape: f32[2,4,256], index: 9, kind: output, shape index: {}]  }
   0x1 LB: > { %s1643_s10 = sadd.s32 4294967295, %s1752_s30   ;;  %p1647_p0 = scmp.ge.s32.totalorder %s1752_s30, 1  ;;  %s1752_s30 = sphi %s1814_s30, %s19_s30  }
   0x2   : > { %p287_p1 = scmp.lt.s32.totalorder %s1752_s30, 3 }
   0x4   : > { %p288_p2 = pnand %p1647_p0, %p287_p1 }
   0x5   : > { %p323_p3 = scmp.lt.s32.totalorder (!%p288_p2), %s1643_s10, 1  ;;  %s1755_s19 = smov (!%p288_p2), 17  }
   0x6   : > { %291 = sbr.rel (%p288_p2) target bundleno = 870 (0x366), region = 56  ;;  %s1756_s20 = smov (!%p288_p2), 16  }
   0x7   : > { %s1757_s21 = smov (!%p288_p2), 15   ;;  %s1758_s22 = smov (!%p288_p2), 1  }
   0x8   : > { %s1759_s23 = smov (!%p288_p2), 127   ;;  %s1760_s24 = smov (!%p288_p2), 113  }
   0x9   : > { %s1761_s25 = smov (!%p288_p2), 112   ;;  %s1762_s26 = smov (!%p288_p2), 111  }
   0xb   : > { %v335_v0 = vld [vmem:[%s2238_s4] sm:$0xf]  ;;  %v1754_v1 = vmov 0   ;;  %s2245_s10 = smov (!%p323_p3, %s1643_s10), 1  ;;  %v364_v17 = vlaneseq  ;;  %v1893_v19 = vld [vmem:[%s2235_s1 + $0x8] sm:$0xff]  ;;  %v1924_v32 = vld [vmem:[%s2235_s1 + $0x10] sm:$0xff] }
   0xc   : > { %1734 = vset.pattern.permute.xlu0 %v1754_v1  ;;  %439 = vmatprep.mubr.bf16.mxu0 %v1754_v1  ;;  %v346_v2 = vld [vmem:[%s2239_s5] sm:$0xf]  ;;  %s1714_s15 = sshll.u32 %s2245_s10, 3  ;;  %v1898_v22 = vcombine.high %v1893_v19, %v1893_v19  ;;  %vm400_vm4 = vcmask 1041408   ;;  %v1940_v42 = vcombine.high %v1924_v32, %v1924_v32  ;;  %vm396_vm6 = vcmask 31744   ;;  %v1949_v45 = vld [vmem:[%s2235_s1 + $0x18] sm:$0xff] }
   0xd   : > { %338 = vperm.xlu0 %1734, %v335_v0   ;;  %489 = vmatprep.mubr.bf16.mxu1 %v1754_v1  ;;  %s327_s18 = scalar_lea.vmem %s2234_s0, %s1714_s15  ;;  %v981_v15 = vld [vmem:[%s2240_s6] sm:$0xf]  ;;  %v1888_v18 = vand.u32 127, %v364_v17  ;;  %v1967_v57 = vcombine.high %v1949_v45, %v1949_v45  ;;  %v1975_v59 = vld [vmem:[%s2235_s1 + $0x28] sm:$0xff] }
   0xe   : > { %1735 = vset.pattern.permute.xlu1 %v1754_v1  ;;  %v1840_v3 = vld [vmem:[%s327_s18] sm:$0xff] }
   0xf   : > { %v342_v4 = vcombine.high %v1840_v3, %v1840_v3  ;;  %v989_v16 = vld [vmem:[%s2241_s7] sm:$0xf]  ;;  %vm382_vm2 = vcmp.lt.s32.totalorder %v1888_v18, 16  ;;  %vm366_vm3 = vcmp.lt.s32.totalorder %v1888_v18, 17  ;;  %vm502_vm5 = vcmp.lt.s32.totalorder %v1888_v18, 15 }
  0x10   : > { %v1903_v23 = vld [vmem:[%s2235_s1] sm:$0xff]  ;;  %vm572_vm7 = vcmp.lt.s32.totalorder %v1888_v18, 1  ;;  %vm705_vm8 = vcmp.lt.s32.totalorder %v1888_v18, 127  ;;  %vm775_vm9 = vcmp.lt.s32.totalorder %v1888_v18, 113  ;;  %vm845_vm10 = vcmp.lt.s32.totalorder %v1888_v18, 112 }
  0x11   : > { %349 = vperm.xlu0 %1734, %v346_v2   ;;  %v1912_v28 = vld [vmem:[%s2235_s1 + $0x20] sm:$0xff]  ;;  %v1919_v31 = vcombine.high %v1903_v23, %v1903_v23  ;;  %vm915_vm11 = vcmp.lt.s32.totalorder %v1888_v18, 111 }
  0x12   : > { %v1928_v37 = vcombine.high %v1912_v28, %v1912_v28  ;;  %v1653_v44 = vld [vmem:[%s2236_s2 + $0x2] sm:$0x3]  ;;  %v377_v58 = vld [vmem:[%s2236_s2] sm:$0x3] }
  0x88   : > { %v339_v5 = vpop.permute.xlu0 %338 }
  0x89   : > { %v344_v6 = vmul.f32 %v339_v5, %v1840_v3  ;;  %v345_v7 = vmul.f32 %v342_v4, %v339_v5 }
  0x8c   : > { %v350_v8 = vpop.permute.xlu0 %349 }
  0x8d   : > { %v352_v9 = vadd.f32 %v350_v8, %v344_v6  ;;  %v353_v10 = vadd.f32 %v350_v8, %v345_v7  ;;  %v1990_v8 = vcombine.high %v1975_v59, %v1975_v59 }
  0x8f   : > { %vm354_vm0 = vcmp.gt.f32.partialorder %v352_v9, 0.0  ;;  %v356_v11 = vmul.f32 0.0, %v352_v9  ;;  %v357_v12 = vmul.f32 0.0, %v353_v10  ;;  %vm355_vm1 = vcmp.gt.f32.partialorder %v353_v10, 0.0 }
  0x91   : > { %v1845_v13 = vsel %vm354_vm0, %v352_v9, %v356_v11  ;;  %v1851_v14 = vsel %vm355_vm1, %v353_v10, %v357_v12  ;;  %v1659_v9 = vld [vmem:[%s2236_s2 + $0x4] sm:$0x3]  ;;  %v1998_v10 = vld [vmem:[%s2235_s1 + $0x30] sm:$0xff] }
  0x92   : > { %360 = vrot.lane.b32.xlu0 %v1845_v13, %s1755_s19  ;;  %378 = vrot.lane.b32.xlu1 %v1845_v13, %s1756_s20  ;;  %v644_v49 = vmul.f32 %v1928_v37, %v1851_v14  ;;  %v643_v52 = vmul.f32 %v1912_v28, %v1845_v13 }
  0x94   : > { %v646_v63 = vpack.c.bf16 %v644_v49, %v644_v49  ;;  %v645_v4 = vpack.c.bf16 %v643_v52, %v643_v52 }
  0x96   : > { %498 = vrot.lane.b32.xlu0 %v1845_v13, %s1757_s21  ;;  %380 = vrot.lane.b32.xlu1 %v1851_v14, %s1756_s20 }
  0x9a   : > { %568 = vrot.lane.b32.xlu0 %v1845_v13, %s1758_s22  ;;  %362 = vrot.lane.b32.xlu1 %v1851_v14, %s1755_s19 }
  0x9e   : > { %701 = vrot.lane.b32.xlu0 %v1845_v13, %s1759_s23  ;;  %500 = vrot.lane.b32.xlu1 %v1851_v14, %s1757_s21 }
  0xa2   : > { %771 = vrot.lane.b32.xlu0 %v1845_v13, %s1760_s24  ;;  %570 = vrot.lane.b32.xlu1 %v1851_v14, %s1758_s22 }
  0xa6   : > { %841 = vrot.lane.b32.xlu0 %v1845_v13, %s1761_s25  ;;  %703 = vrot.lane.b32.xlu1 %v1851_v14, %s1759_s23 }
  0xaa   : > { %911 = vrot.lane.b32.xlu0 %v1845_v13, %s1762_s26  ;;  %773 = vrot.lane.b32.xlu1 %v1851_v14, %s1760_s24 }
  0xae   : > { %984 = vperm.xlu0 %1734, %v981_v15   ;;  %843 = vrot.lane.b32.xlu1 %v1851_v14, %s1761_s25 }
  0xb2   : > { %913 = vrot.lane.b32.xlu1 %v1851_v14, %s1762_s26 }
  0xb6   : > { %992 = vperm.xlu1 %1735, %v989_v16  }
 0x104   : > { %v361_v20 = vpop.permute.xlu0 %360  ;;  %v379_v21 = vpop.permute.xlu1 %378 }
 0x108   : > { %v499_v24 = vpop.permute.xlu0 %498  ;;  %v381_v25 = vpop.permute.xlu1 %380 }
 0x109   : > { %v383_v26 = vsel %vm382_vm2, %v379_v21, %v381_v25  ;;  %v384_v27 = vsel %vm382_vm2, %v381_v25, %v379_v21 }
 0x10a   : > { %v390_v29 = vmul.f32 %v1893_v19, %v384_v27  ;;  %v391_v30 = vmul.f32 %v1898_v22, %v383_v26  ;;  %v2015_v26 = vcombine.high %v1998_v10, %v1998_v10  ;;  %v1663_v27 = vld [vmem:[%s2236_s2 + $0x6] sm:$0x3] }
 0x10c   : > { %v569_v33 = vpop.permute.xlu0 %568  ;;  %v363_v34 = vpop.permute.xlu1 %362  ;;  %v393_v35 = vpack.c.bf16 %v391_v30, %v391_v30  ;;  %v392_v36 = vpack.c.bf16 %v390_v29, %v390_v29  ;;  %v2023_v29 = vld [vmem:[%s2235_s1 + $0x38] sm:$0xff] }
 0x10d   : > { %v367_v38 = vsel %vm366_vm3, %v361_v20, %v363_v34  ;;  %v368_v39 = vsel %vm366_vm3, %v363_v34, %v361_v20  ;;  %v653_v20 = vsel %vm400_vm4, %v645_v4, 0 }
 0x10e   : > { %v373_v40 = vmul.f32 %v1903_v23, %v368_v39  ;;  %1654 = vmatprep.subr.msk.bf16.mxu0 %vm400_vm4, %v393_v35  ;;  %v402_v41 = vsel %vm400_vm4, %v392_v36, 0  ;;  %v374_v43 = vmul.f32 %v1919_v31, %v367_v38 }
 0x10f   : > { %422 = vmatpush1.bf16.msra.mxu0 %v402_v41 }
 0x110   : > { %v501_v46 = vpop.permute.xlu1 %500  ;;  %v376_v47 = vpack.c.bf16 %v374_v43, %v374_v43  ;;  %v375_v48 = vpack.c.bf16 %v373_v40, %v373_v40  ;;  %v702_v53 = vpop.permute.xlu0 %701  ;;  %v2038_v43 = vcombine.high %v2023_v29, %v2023_v29 }
 0x111   : > { %v503_v50 = vsel %vm502_vm5, %v499_v24, %v501_v46  ;;  %v504_v51 = vsel %vm502_vm5, %v501_v46, %v499_v24  ;;  %v2046_v46 = vld [vmem:[%s2235_s1 + $0x40] sm:$0xff] }
 0x112   : > { %v510_v54 = vmul.f32 %v1924_v32, %v504_v51  ;;  %v511_v55 = vmul.f32 %v1940_v42, %v503_v50  ;;  %1655 = vmatmul.mubr.msk.bf16.vlgmr.msra.gmra.mxu0 %vm396_vm6, %v1653_v44  ;;  %1656 = vmatprep.subr.msk.bf16.mxu1 %vm400_vm4, %v376_v47  ;;  %v452_v56 = vsel %vm400_vm4, %v375_v48, 0  ;;  %v1667_v44 = vld [vmem:[%s2236_s2 + $0x8] sm:$0x3] }
 0x113   : > { %472 = vmatpush1.bf16.msra.mxu1 %v452_v56  ;;  %557 = vmatprep.mubr.bf16.mxu0 %v1754_v1  ;;  %v1671_v56 = vld [vmem:[%s2236_s2 + $0xa] sm:$0x3] }
 0x114   : > { %v512_v60 = vpack.c.bf16 %v510_v54, %v510_v54  ;;  %v513_v61 = vpack.c.bf16 %v511_v55, %v511_v55  ;;  %v571_v62 = vpop.permute.xlu1 %570  ;;  %v772_v11 = vpop.permute.xlu0 %771  ;;  %v2061_v55 = vcombine.high %v2046_v46, %v2046_v46 }
 0x115   : > { %v573_v0 = vsel %vm572_vm7, %v569_v33, %v571_v62  ;;  %v574_v2 = vsel %vm572_vm7, %v571_v62, %v569_v33 }
 0x116   : > { %v580_v5 = vmul.f32 %v1949_v45, %v574_v2  ;;  %v581_v6 = vmul.f32 %v1967_v57, %v573_v0  ;;  %1657 = vmatmul.mubr.msk.bf16.vlgmr.msra.gmra.mxu1 %vm396_vm6, %v377_v58  ;;  %1660 = vmatprep.subr.msk.bf16.mxu0 %vm400_vm4, %v513_v61  ;;  %v520_v7 = vsel %vm400_vm4, %v512_v60, 0 }
 0x117   : > { %540 = vmatpush1.bf16.msra.mxu0 %v520_v7  ;;  %627 = vmatprep.mubr.bf16.mxu1 %v1754_v1 }
 0x118   : > { %v582_v12 = vpack.c.bf16 %v580_v5, %v580_v5  ;;  %v583_v13 = vpack.c.bf16 %v581_v6, %v581_v6  ;;  %v704_v14 = vpop.permute.xlu1 %703  ;;  %1668 = vmatprep.subr.msk.bf16.mxu0 %vm400_vm4, %v646_v63  ;;  %v842_v38 = vpop.permute.xlu0 %841  ;;  %v1675_v6 = vld [vmem:[%s2236_s2 + $0xc] sm:$0x3] }
 0x119   : > { %v706_v15 = vsel %vm705_vm8, %v702_v53, %v704_v14  ;;  %v707_v16 = vsel %vm705_vm8, %v704_v14, %v702_v53 }
 0x11a   : > { %v713_v21 = vmul.f32 %v1975_v59, %v706_v15  ;;  %v714_v24 = vmul.f32 %v1990_v8, %v707_v16  ;;  %1661 = vmatmul.mubr.msk.bf16.vlgmr.msra.gmra.mxu0 %vm396_vm6, %v1659_v9  ;;  %1664 = vmatprep.subr.msk.bf16.mxu1 %vm400_vm4, %v583_v13  ;;  %v590_v25 = vsel %vm400_vm4, %v582_v12, 0  ;;  %v1679_v12 = vld [vmem:[%s2236_s2 + $0xe] sm:$0x3]  ;;  %v1683_v13 = vld [vmem:[%s2236_s2 + $0x10] sm:$0x3] }
 0x11b   : > { %610 = vmatpush1.bf16.msra.mxu1 %v590_v25  ;;  %673 = vmatpush1.bf16.msra.mxu0 %v653_v20 }
 0x11c   : > { %v715_v30 = vpack.c.bf16 %v713_v21, %v713_v21  ;;  %v716_v33 = vpack.c.bf16 %v714_v24, %v714_v24  ;;  %v774_v34 = vpop.permute.xlu1 %773  ;;  %690 = vmatprep.mubr.bf16.mxu0 %v1754_v1  ;;  %v912_v58 = vpop.permute.xlu0 %911 }
 0x11d   : > { %v776_v35 = vsel %vm775_vm9, %v772_v11, %v774_v34  ;;  %v777_v36 = vsel %vm775_vm9, %v774_v34, %v772_v11 }
 0x11e   : > { %v783_v39 = vmul.f32 %v1998_v10, %v776_v35  ;;  %v784_v40 = vmul.f32 %v2015_v26, %v777_v36  ;;  %1665 = vmatmul.mubr.msk.bf16.vlgmr.msra.gmra.mxu1 %vm396_vm6, %v1663_v27  ;;  %1672 = vmatprep.subr.msk.bf16.mxu1 %vm400_vm4, %v716_v33  ;;  %v723_v41 = vsel %vm400_vm4, %v715_v30, 0 }
 0x11f   : > { %743 = vmatpush1.bf16.msra.mxu1 %v723_v41  ;;  %760 = vmatprep.mubr.bf16.mxu1 %v1754_v1 }
 0x120   : > { %v785_v47 = vpack.c.bf16 %v783_v39, %v783_v39  ;;  %v786_v48 = vpack.c.bf16 %v784_v40, %v784_v40  ;;  %v844_v49 = vpop.permute.xlu1 %843 }
 0x121   : > { %v846_v50 = vsel %vm845_vm10, %v842_v38, %v844_v49  ;;  %v847_v51 = vsel %vm845_vm10, %v844_v49, %v842_v38 }
 0x122   : > { %v853_v52 = vmul.f32 %v2023_v29, %v846_v50  ;;  %v854_v53 = vmul.f32 %v2038_v43, %v847_v51  ;;  %1669 = vmatmul.mubr.msk.bf16.vlgmr.msra.gmra.mxu0 %vm396_vm6, %v1667_v44  ;;  %1676 = vmatprep.subr.msk.bf16.mxu0 %vm400_vm4, %v786_v48  ;;  %v793_v54 = vsel %vm400_vm4, %v785_v47, 0 }
 0x123   : > { %813 = vmatpush1.bf16.msra.mxu0 %v793_v54  ;;  %830 = vmatprep.mubr.bf16.mxu0 %v1754_v1 }
 0x124   : > { %v855_v60 = vpack.c.bf16 %v853_v52, %v853_v52  ;;  %v856_v61 = vpack.c.bf16 %v854_v53, %v854_v53  ;;  %v914_v62 = vpop.permute.xlu1 %913 }
 0x125   : > { %v916_v63 = vsel %vm915_vm11, %v912_v58, %v914_v62  ;;  %v917_v0 = vsel %vm915_vm11, %v914_v62, %v912_v58 }
 0x126   : > { %v923_v2 = vmul.f32 %v2046_v46, %v916_v63  ;;  %v924_v4 = vmul.f32 %v2061_v55, %v917_v0  ;;  %1673 = vmatmul.mubr.msk.bf16.vlgmr.msra.gmra.mxu1 %vm396_vm6, %v1671_v56  ;;  %1680 = vmatprep.subr.msk.bf16.mxu1 %vm400_vm4, %v856_v61  ;;  %v863_v5 = vsel %vm400_vm4, %v855_v60, 0 }
 0x127   : > { %883 = vmatpush1.bf16.msra.mxu1 %v863_v5  ;;  %900 = vmatprep.mubr.bf16.mxu1 %v1754_v1 }
 0x128   : > { %v925_v7 = vpack.c.bf16 %v923_v2, %v923_v2  ;;  %v926_v9 = vpack.c.bf16 %v924_v4, %v924_v4 }
 0x12a   : > { %1677 = vmatmul.mubr.msk.bf16.vlgmr.msra.gmra.mxu0 %vm396_vm6, %v1675_v6  ;;  %1684 = vmatprep.subr.msk.bf16.mxu0 %vm400_vm4, %v926_v9  ;;  %v933_v11 = vsel %vm400_vm4, %v925_v7, 0 }
 0x12b   : > { %953 = vmatpush1.bf16.msra.mxu0 %v933_v11  ;;  %970 = vmatprep.mubr.bf16.mxu0 %v1754_v1 }
 0x12e   : > { %1681 = vmatmul.mubr.msk.bf16.vlgmr.msra.gmra.mxu1 %vm396_vm6, %v1679_v12 }
 0x12f   : > { %1067 = vmatprep.mubr.bf16.mxu1 %v1754_v1 }
 0x132   : > { %1685 = vmatmul.mubr.msk.bf16.vlgmr.msra.gmra.mxu0 %vm396_vm6, %v1683_v13 }
 0x133   : > { %1117 = vmatprep.mubr.bf16.mxu0 %v1754_v1 }
 0x1d2   : > { %v441_v14 = vpop.f32.mrf.mxu0 }
 0x1d4   : > { %v443_v15 = vpop.f32.mrf.mxu0 }
 0x1d6   : > { %v445_v16 = vpop.f32.mrf.mxu0  ;;  %v491_v20 = vpop.f32.mrf.mxu1 }
 0x1d7   : > { %v492_v47 = vadd.f32 %v491_v20, %v441_v14  ;;  %v985_v20 = vpop.permute.xlu0 %984 }
 0x1d8   : > { %v446_v21 = vpop.f32.mrf.mxu0  ;;  %v493_v24 = vpop.f32.mrf.mxu1 }
 0x1d9   : > { %v494_v50 = vadd.f32 %v493_v24, %v443_v15 }
 0x1da   : > { %v495_v25 = vpop.f32.mrf.mxu1  ;;  %v559_v27 = vpop.f32.mrf.mxu0 }
 0x1db   : > { %v566_v51 = vadd.f32 %v559_v27, %v492_v47  ;;  %v993_v25 = vpop.permute.xlu1 %992 }
 0x1dc   : > { %v496_v30 = vpop.f32.mrf.mxu1  ;;  %v561_v33 = vpop.f32.mrf.mxu0 }
 0x1dd   : > { %v567_v54 = vadd.f32 %v561_v33, %v494_v50 }
 0x1de   : > { %v563_v34 = vpop.f32.mrf.mxu0  ;;  %v629_v35 = vpop.f32.mrf.mxu1 }
 0x1df   : > { %v636_v56 = vadd.f32 %v629_v35, %v566_v51 }
 0x1e0   : > { %v564_v36 = vpop.f32.mrf.mxu0  ;;  %v631_v38 = vpop.f32.mrf.mxu1 }
 0x1e1   : > { %v637_v61 = vadd.f32 %v631_v38, %v567_v54 }
 0x1e2   : > { %v633_v39 = vpop.f32.mrf.mxu1  ;;  %v692_v40 = vpop.f32.mrf.mxu0 }
 0x1e3   : > { %v699_v62 = vadd.f32 %v692_v40, %v636_v56 }
 0x1e4   : > { %v634_v41 = vpop.f32.mrf.mxu1  ;;  %v694_v44 = vpop.f32.mrf.mxu0 }
 0x1e5   : > { %v700_v2 = vadd.f32 %v694_v44, %v637_v61 }
 0x1e6   : > { %v696_v48 = vpop.f32.mrf.mxu0  ;;  %v762_v49 = vpop.f32.mrf.mxu1 }
 0x1e7   : > { %v769_v4 = vadd.f32 %v762_v49, %v699_v62  ;;  %v1573_v49 = vld [vmem:[%s2242_s8] sm:$0xf] }
 0x1e8   : > { %v697_v52 = vpop.f32.mrf.mxu0  ;;  %v764_v53 = vpop.f32.mrf.mxu1 }
 0x1e9   : > { %v770_v7 = vadd.f32 %v764_v53, %v700_v2 }
 0x1ea   : > { %v766_v58 = vpop.f32.mrf.mxu1  ;;  %v832_v60 = vpop.f32.mrf.mxu0 }
 0x1eb   : > { %v839_v9 = vadd.f32 %v832_v60, %v769_v4 }
 0x1ec   : > { %v767_v63 = vpop.f32.mrf.mxu1  ;;  %v834_v0 = vpop.f32.mrf.mxu0 }
 0x1ed   : > { %v840_v13 = vadd.f32 %v834_v0, %v770_v7 }
 0x1ee   : > { %v836_v5 = vpop.f32.mrf.mxu0  ;;  %v902_v6 = vpop.f32.mrf.mxu1 }
 0x1ef   : > { %v909_v14 = vadd.f32 %v902_v6, %v839_v9 }
 0x1f0   : > { %v837_v11 = vpop.f32.mrf.mxu0  ;;  %v904_v12 = vpop.f32.mrf.mxu1 }
 0x1f1   : > { %v910_v21 = vadd.f32 %v904_v12, %v840_v13 }
 0x1f2   : > { %v906_v15 = vpop.f32.mrf.mxu1  ;;  %v972_v16 = vpop.f32.mrf.mxu0 }
 0x1f3   : > { %v979_v24 = vadd.f32 %v972_v16, %v909_v14 }
 0x1f4   : > { %v907_v27 = vpop.f32.mrf.mxu1  ;;  %v974_v30 = vpop.f32.mrf.mxu0 }
 0x1f5   : > { %v987_v33 = vmul.f32 %v985_v20, %v979_v24  ;;  %v980_v34 = vadd.f32 %v974_v30, %v910_v21 }
 0x1f6   : > { %v976_v35 = vpop.f32.mrf.mxu0 }
 0x1f7   : > { %v988_v36 = vmul.f32 %v985_v20, %v980_v34  ;;  %v995_v38 = vadd.f32 %v993_v25, %v987_v33  ;;  %v1013_v20 = vld [vmem:[%s2237_s3] sm:$0x3]  ;;  %v1691_v35 = vld [vmem:[%s2237_s3 + $0x4] sm:$0x3] }
 0x1f8   : > { %v977_v39 = vpop.f32.mrf.mxu0 }
 0x1f9   : > { %v996_v40 = vadd.f32 %v993_v25, %v988_v36  ;;  %vm997_vm12 = vcmp.gt.f32.partialorder %v995_v38, 0.0  ;;  %v999_v41 = vmul.f32 0.0, %v995_v38 }
 0x1fb   : > { %vm998_vm13 = vcmp.gt.f32.partialorder %v996_v40, 0.0  ;;  %v1000_v44 = vmul.f32 0.0, %v996_v40  ;;  %v1001_v47 = vsel %vm997_vm12, %v995_v38, %v999_v41 }
 0x1fc   : > { %1014 = vrot.lane.b32.xlu0 %v1001_v47, %s1756_s20 }
 0x1fd   : > { %v1002_v48 = vsel %vm998_vm13, %v996_v40, %v1000_v44 }
 0x1fe   : > { %1016 = vrot.lane.b32.xlu1 %v1002_v48, %s1756_s20  ;;  %v1255_v16 = vmul.f32 %v1002_v48, %v1928_v37 }
 0x200   : > { %1003 = vrot.lane.b32.xlu0 %v1001_v47, %s1755_s19  ;;  %v1257_v34 = vpack.c.bf16 %v1255_v16, %v1255_v16 }
 0x202   : > { %1005 = vrot.lane.b32.xlu1 %v1002_v48, %s1755_s19 }
 0x204   : > { %1126 = vrot.lane.b32.xlu0 %v1001_v47, %s1757_s21 }
 0x206   : > { %1128 = vrot.lane.b32.xlu1 %v1002_v48, %s1757_s21 }
 0x208   : > { %1190 = vrot.lane.b32.xlu0 %v1001_v47, %s1758_s22 }
 0x20a   : > { %1192 = vrot.lane.b32.xlu1 %v1002_v48, %s1758_s22 }
 0x20c   : > { %1312 = vrot.lane.b32.xlu0 %v1001_v47, %s1759_s23 }
 0x20e   : > { %1314 = vrot.lane.b32.xlu1 %v1002_v48, %s1759_s23  ;;  %s332_s23 = scalar_lea.vmem %s2243_s9, %s1714_s15 }
 0x210   : > { %1376 = vrot.lane.b32.xlu0 %v1001_v47, %s1760_s24 }
 0x212   : > { %1378 = vrot.lane.b32.xlu1 %v1002_v48, %s1760_s24 }
 0x214   : > { %1440 = vrot.lane.b32.xlu0 %v1001_v47, %s1761_s25 }
 0x216   : > { %1442 = vrot.lane.b32.xlu1 %v1002_v48, %s1761_s25 }
 0x218   : > { %1504 = vrot.lane.b32.xlu0 %v1001_v47, %s1762_s26 }
 0x21a   : > { %1506 = vrot.lane.b32.xlu1 %v1002_v48, %s1762_s26 }
 0x21c   : > { %1576 = vperm.xlu0 %1734, %v1573_v49   ;;  %v1694_v49 = vld [vmem:[%s2237_s3 + $0x6] sm:$0x3] }
 0x26e   : > { %v1015_v50 = vpop.permute.xlu0 %1014 }
 0x270   : > { %v1017_v51 = vpop.permute.xlu1 %1016 }
 0x271   : > { %v1018_v52 = vsel %vm382_vm2, %v1015_v50, %v1017_v51  ;;  %v1019_v53 = vsel %vm382_vm2, %v1017_v51, %v1015_v50 }
 0x272   : > { %v1020_v54 = vmul.f32 %v1893_v19, %v1019_v53  ;;  %v1021_v56 = vmul.f32 %v1018_v52, %v1898_v22  ;;  %v1004_v58 = vpop.permute.xlu0 %1003  ;;  %v1686_v22 = vld [vmem:[%s2237_s3 + $0x2] sm:$0x3] }
 0x274   : > { %v1022_v60 = vpack.c.bf16 %v1020_v54, %v1020_v54  ;;  %v1023_v61 = vpack.c.bf16 %v1021_v56, %v1021_v56  ;;  %v1006_v62 = vpop.permute.xlu1 %1005 }
 0x275   : > { %v1007_v63 = vsel %vm366_vm3, %v1004_v58, %v1006_v62  ;;  %v1008_v0 = vsel %vm366_vm3, %v1006_v62, %v1004_v58 }
 0x276   : > { %v1009_v2 = vmul.f32 %v1008_v0, %v1903_v23  ;;  %v1010_v4 = vmul.f32 %v1007_v63, %v1919_v31  ;;  %v1127_v5 = vpop.permute.xlu0 %1126  ;;  %1687 = vmatprep.subr.msk.bf16.mxu1 %vm400_vm4, %v1023_v61  ;;  %v1030_v19 = vsel %vm400_vm4, %v1022_v60, 0  ;;  %v1254_v31 = vmul.f32 %v1912_v28, %v1001_v47  ;;  %v1697_v60 = vld [vmem:[%s2237_s3 + $0x8] sm:$0x3] }
 0x277   : > { %1050 = vmatpush1.bf16.msra.mxu1 %v1030_v19 }
 0x278   : > { %v1011_v6 = vpack.c.bf16 %v1009_v2, %v1009_v2  ;;  %v1012_v7 = vpack.c.bf16 %v1010_v4, %v1010_v4  ;;  %v1129_v9 = vpop.permute.xlu1 %1128  ;;  %v1256_v25 = vpack.c.bf16 %v1254_v31, %v1254_v31  ;;  %v1703_v31 = vld [vmem:[%s2237_s3 + $0xc] sm:$0x3] }
 0x279   : > { %v1130_v11 = vsel %vm502_vm5, %v1127_v5, %v1129_v9  ;;  %v1131_v23 = vsel %vm502_vm5, %v1129_v9, %v1127_v5  ;;  %v1700_v5 = vld [vmem:[%s2237_s3 + $0xa] sm:$0x3] }
 0x27a   : > { %v1132_v12 = vmul.f32 %v1924_v32, %v1131_v23  ;;  %v1133_v13 = vmul.f32 %v1130_v11, %v1940_v42  ;;  %v1191_v14 = vpop.permute.xlu0 %1190  ;;  %1688 = vmatmul.mubr.msk.bf16.vlgmr.msra.gmra.mxu1 %vm396_vm6, %v1686_v22  ;;  %1689 = vmatprep.subr.msk.bf16.mxu0 %vm400_vm4, %v1012_v7  ;;  %v1080_v15 = vsel %vm400_vm4, %v1011_v6, 0  ;;  %v1264_v48 = vsel %vm400_vm4, %v1256_v25, 0 }
 0x27b   : > { %1100 = vmatpush1.bf16.msra.mxu0 %v1080_v15  ;;  %1179 = vmatprep.mubr.bf16.mxu1 %v1754_v1 }
 0x27c   : > { %v1134_v28 = vpack.c.bf16 %v1132_v12, %v1132_v12  ;;  %v1135_v32 = vpack.c.bf16 %v1133_v13, %v1133_v13  ;;  %v1193_v21 = vpop.permute.xlu1 %1192  ;;  %v1709_v13 = vld [vmem:[%s2237_s3 + $0x10] sm:$0x3] }
 0x27d   : > { %v1194_v42 = vsel %vm572_vm7, %v1191_v14, %v1193_v21  ;;  %v1195_v24 = vsel %vm572_vm7, %v1193_v21, %v1191_v14 }
 0x27e   : > { %v1196_v27 = vmul.f32 %v1949_v45, %v1195_v24  ;;  %v1197_v37 = vmul.f32 %v1194_v42, %v1967_v57  ;;  %v1313_v30 = vpop.permute.xlu0 %1312  ;;  %1690 = vmatmul.mubr.msk.bf16.vlgmr.msra.gmra.mxu0 %vm396_vm6, %v1013_v20  ;;  %1692 = vmatprep.subr.msk.bf16.mxu1 %vm400_vm4, %v1135_v32  ;;  %v1142_v33 = vsel %vm400_vm4, %v1134_v28, 0 }
 0x27f   : > { %1162 = vmatpush1.bf16.msra.mxu1 %v1142_v33  ;;  %1243 = vmatprep.mubr.bf16.mxu0 %v1754_v1 }
 0x280   : > { %v1198_v36 = vpack.c.bf16 %v1196_v27, %v1196_v27  ;;  %v1199_v38 = vpack.c.bf16 %v1197_v37, %v1197_v37  ;;  %v1315_v45 = vpop.permute.xlu1 %1314  ;;  %1698 = vmatprep.subr.msk.bf16.mxu1 %vm400_vm4, %v1257_v34 }
 0x281   : > { %v1316_v57 = vsel %vm705_vm8, %v1313_v30, %v1315_v45  ;;  %v1317_v39 = vsel %vm705_vm8, %v1315_v45, %v1313_v30 }
 0x282   : > { %v1318_v40 = vmul.f32 %v1975_v59, %v1316_v57  ;;  %v1319_v41 = vmul.f32 %v1317_v39, %v1990_v8  ;;  %v1377_v44 = vpop.permute.xlu0 %1376  ;;  %1693 = vmatmul.mubr.msk.bf16.vlgmr.msra.gmra.mxu1 %vm396_vm6, %v1691_v35  ;;  %1695 = vmatprep.subr.msk.bf16.mxu0 %vm400_vm4, %v1199_v38  ;;  %v1206_v47 = vsel %vm400_vm4, %v1198_v36, 0 }
 0x283   : > { %1226 = vmatpush1.bf16.msra.mxu0 %v1206_v47  ;;  %1284 = vmatpush1.bf16.msra.mxu1 %v1264_v48 }
 0x284   : > { %v1320_v50 = vpack.c.bf16 %v1318_v40, %v1318_v40  ;;  %v1321_v51 = vpack.c.bf16 %v1319_v41, %v1319_v41  ;;  %v1379_v59 = vpop.permute.xlu1 %1378  ;;  %1301 = vmatprep.mubr.bf16.mxu1 %v1754_v1 }
 0x285   : > { %v1380_v8 = vsel %vm775_vm9, %v1377_v44, %v1379_v59  ;;  %v1381_v52 = vsel %vm775_vm9, %v1379_v59, %v1377_v44 }
 0x286   : > { %v1382_v53 = vmul.f32 %v1998_v10, %v1380_v8  ;;  %v1383_v54 = vmul.f32 %v1381_v52, %v2015_v26  ;;  %v1441_v56 = vpop.permute.xlu0 %1440  ;;  %1696 = vmatmul.mubr.msk.bf16.vlgmr.msra.gmra.mxu0 %vm396_vm6, %v1694_v49  ;;  %1701 = vmatprep.subr.msk.bf16.mxu0 %vm400_vm4, %v1321_v51  ;;  %v1328_v58 = vsel %vm400_vm4, %v1320_v50, 0  ;;  %v1763_v52 = vmov 839922192  }
 0x287   : > { %1348 = vmatpush1.bf16.msra.mxu0 %v1328_v58  ;;  %1365 = vmatprep.mubr.bf16.mxu0 %v1754_v1 }
 0x288   : > { %v1384_v61 = vpack.c.bf16 %v1382_v53, %v1382_v53  ;;  %v1385_v62 = vpack.c.bf16 %v1383_v54, %v1383_v54  ;;  %v1443_v63 = vpop.permute.xlu1 %1442  ;;  %v1579_v53 = vunpack.c.l.s4 %v1763_v52 }
 0x289   : > { %v1444_v10 = vsel %vm845_vm10, %v1441_v56, %v1443_v63  ;;  %v1445_v26 = vsel %vm845_vm10, %v1443_v63, %v1441_v56 }
 0x28a   : > { %v1446_v0 = vmul.f32 %v2023_v29, %v1444_v10  ;;  %v1447_v2 = vmul.f32 %v1445_v26, %v2038_v43  ;;  %1699 = vmatmul.mubr.msk.bf16.vlgmr.msra.gmra.mxu1 %vm396_vm6, %v1697_v60  ;;  %1704 = vmatprep.subr.msk.bf16.mxu1 %vm400_vm4, %v1385_v62  ;;  %v1392_v4 = vsel %vm400_vm4, %v1384_v61, 0  ;;  %v1505_v6 = vpop.permute.xlu0 %1504  ;;  %v1580_v26 = vunpack.c.0.s8 %v1579_v53 }
 0x28b   : > { %1412 = vmatpush1.bf16.msra.mxu1 %v1392_v4  ;;  %1429 = vmatprep.mubr.bf16.mxu1 %v1754_v1 }
 0x28c   : > { %v1448_v19 = vpack.c.bf16 %v1446_v0, %v1446_v0  ;;  %v1449_v22 = vpack.c.bf16 %v1447_v2, %v1447_v2  ;;  %v1507_v7 = vpop.permute.xlu1 %1506  ;;  %v1582_v0 = vshrl.u32 %v364_v17, 7 }
 0x28d   : > { %v1508_v29 = vsel %vm915_vm11, %v1505_v6, %v1507_v7  ;;  %v1509_v43 = vsel %vm915_vm11, %v1507_v7, %v1505_v6 }
 0x28e   : > { %v1510_v9 = vmul.f32 %v2046_v46, %v1508_v29  ;;  %v1511_v11 = vmul.f32 %v1509_v43, %v2061_v55  ;;  %1702 = vmatmul.mubr.msk.bf16.vlgmr.msra.gmra.mxu0 %vm396_vm6, %v1700_v5  ;;  %1707 = vmatprep.subr.msk.bf16.mxu0 %vm400_vm4, %v1449_v22  ;;  %v1456_v23 = vsel %vm400_vm4, %v1448_v19, 0  ;;  %v1706_v55 = vld [vmem:[%s2237_s3 + $0xe] sm:$0x3]  ;;  %v1583_v43 = vsub.s32 %v1580_v26, %v1582_v0 }
 0x28f   : > { %1476 = vmatpush1.bf16.msra.mxu0 %v1456_v23  ;;  %1493 = vmatprep.mubr.bf16.mxu0 %v1754_v1 }
 0x290   : > { %v1512_v12 = vpack.c.bf16 %v1510_v9, %v1510_v9  ;;  %v1513_v18 = vpack.c.bf16 %v1511_v11, %v1511_v11 }
 0x292   : > { %1705 = vmatmul.mubr.msk.bf16.vlgmr.msra.gmra.mxu1 %vm396_vm6, %v1703_v31  ;;  %1710 = vmatprep.subr.msk.bf16.mxu1 %vm400_vm4, %v1513_v18  ;;  %v1520_v46 = vsel %vm400_vm4, %v1512_v12, 0 }
 0x293   : > { %1540 = vmatpush1.bf16.msra.mxu1 %v1520_v46  ;;  %1557 = vmatprep.mubr.bf16.mxu1 %v1754_v1 }
 0x296   : > { %1708 = vmatmul.mubr.msk.bf16.vlgmr.msra.gmra.mxu0 %vm396_vm6, %v1706_v55 }
 0x297   : > { %v1577_v23 = vpop.permute.xlu0 %1576 }
 0x298   : > { %v1584_v46 = vrot.slane %v1577_v23, %v1583_v43 }
 0x29a   : > { %1711 = vmatmul.mubr.msk.bf16.vlgmr.msra.gmra.mxu1 %vm396_vm6, %v1709_v13 }
 0x33a   : > { %v1069_v14 = vpop.f32.mrf.mxu1 }
 0x33c   : > { %v1071_v15 = vpop.f32.mrf.mxu1 }
 0x33e   : > { %v1073_v16 = vpop.f32.mrf.mxu1  ;;  %v1119_v20 = vpop.f32.mrf.mxu0 }
 0x33f   : > { %v1120_v57 = vadd.f32 %v1119_v20, %v1069_v14 }
 0x340   : > { %v1074_v28 = vpop.f32.mrf.mxu1  ;;  %v1121_v32 = vpop.f32.mrf.mxu0 }
 0x341   : > { %v1122_v39 = vadd.f32 %v1121_v32, %v1071_v15 }
 0x342   : > { %v1123_v21 = vpop.f32.mrf.mxu0  ;;  %v1181_v42 = vpop.f32.mrf.mxu1 }
 0x343   : > { %v1188_v44 = vadd.f32 %v1181_v42, %v1120_v57 }
 0x344   : > { %v1124_v24 = vpop.f32.mrf.mxu0  ;;  %v1183_v25 = vpop.f32.mrf.mxu1 }
 0x345   : > { %v1189_v47 = vadd.f32 %v1183_v25, %v1122_v39 }
 0x346   : > { %v1185_v27 = vpop.f32.mrf.mxu1  ;;  %v1245_v1 = vpop.f32.mrf.mxu0 }
 0x347   : > { %v1252_v50 = vadd.f32 %v1245_v1, %v1188_v44 }
 0x348   : > { %v1186_v37 = vpop.f32.mrf.mxu1  ;;  %v1247_v30 = vpop.f32.mrf.mxu0 }
 0x349   : > { %v1253_v51 = vadd.f32 %v1247_v30, %v1189_v47 }
 0x34a   : > { %v1249_v33 = vpop.f32.mrf.mxu0  ;;  %v1303_v34 = vpop.f32.mrf.mxu1 }
 0x34b   : > { %v1310_v54 = vadd.f32 %v1303_v34, %v1252_v50 }
 0x34c   : > { %v1250_v35 = vpop.f32.mrf.mxu0  ;;  %v1305_v36 = vpop.f32.mrf.mxu1 }
 0x34d   : > { %v1311_v56 = vadd.f32 %v1305_v36, %v1253_v51 }
 0x34e   : > { %v1307_v38 = vpop.f32.mrf.mxu1  ;;  %v1367_v45 = vpop.f32.mrf.mxu0 }
 0x34f   : > { %v1374_v61 = vadd.f32 %v1367_v45, %v1310_v54 }
 0x350   : > { %v1308_v40 = vpop.f32.mrf.mxu1  ;;  %v1369_v41 = vpop.f32.mrf.mxu0 }
 0x351   : > { %v1375_v62 = vadd.f32 %v1369_v41, %v1311_v56 }
 0x352   : > { %v1371_v48 = vpop.f32.mrf.mxu0  ;;  %v1431_v49 = vpop.f32.mrf.mxu1 }
 0x353   : > { %v1438_v2 = vadd.f32 %v1431_v49, %v1374_v61 }
 0x354   : > { %v1372_v59 = vpop.f32.mrf.mxu0  ;;  %v1433_v8 = vpop.f32.mrf.mxu1 }
 0x355   : > { %v1439_v4 = vadd.f32 %v1433_v8, %v1375_v62 }
 0x356   : > { %v1435_v58 = vpop.f32.mrf.mxu1  ;;  %v1495_v60 = vpop.f32.mrf.mxu0 }
 0x357   : > { %v1502_v22 = vadd.f32 %v1495_v60, %v1438_v2 }
 0x358   : > { %v1436_v63 = vpop.f32.mrf.mxu1  ;;  %v1497_v10 = vpop.f32.mrf.mxu0 }
 0x359   : > { %v1503_v6 = vadd.f32 %v1497_v10, %v1439_v4 }
 0x35a   : > { %v1559_v5 = vpop.f32.mrf.mxu1  ;;  %v1499_v19 = vpop.f32.mrf.mxu0 }
 0x35b   : > { %v1566_v9 = vadd.f32 %v1559_v5, %v1502_v22 }
 0x35c   : > { %v1561_v7 = vpop.f32.mrf.mxu1  ;;  %v1500_v29 = vpop.f32.mrf.mxu0 }
 0x35d   : > { %v1567_v11 = vadd.f32 %v1561_v7, %v1503_v6 }
 0x35e   : > { %v1563_v31 = vpop.f32.mrf.mxu1 }
 0x35f   : > { %v1570_v12 = vcombine.low %v1566_v9, %v1567_v11 }
 0x360   : > { %v1564_v18 = vpop.f32.mrf.mxu1 }
 0x361   : > { %v1572_v55 = vadd.f32 %v1570_v12, %v1840_v3 }
 0x363   : > { %v1586_v17 = vadd.f32 %v1584_v46, %v1572_v55 }
 0x365   : > { %1587 = vst [vmem:[%s332_s23] sm:$0xff] %v1586_v17 }
 0x366 PF: > { %s19_s30 = sadd.s32 1, %s1752_s30  }
 0x367   : > { %p16_p4 = scmp.ge.s32.totalorder %s19_s30, 4  }
 0x369   :  { %18 = sbr.rel (!%p16_p4) target bundleno = 1 (0x1), region = 110 }

</bundles_post_ra>
